<compile_context>
chip_gen: v6e
topology: v6e:2x2x1
jax: 0.10.0
libtpu: 0.0.40
codegen_flags: <defaults>
</compile_context>

<pallas_src>
import functools

import jax
import jax.numpy as jnp
from jax.experimental import pallas as pl
from jax.experimental.pallas import tpu as pltpu

SIMNORM_DIM = 8
LN_EPS = 1e-5


def _round_up(x, m):
    return -(-x // m) * m


# ----------------------------------------------------------------------------
# Kernel
# ----------------------------------------------------------------------------
def _encoder_kernel(x_ref, w1_ref, w2_ref, vecs_ref, masks_ref, o_ref, *,
                    packed, latent_size):
    """One batch tile: Linear->LN->Mish->Linear->LN->SimNorm.

    packed=True  : each physical row holds 2 logical rows (lane-dense small L);
                   LayerNorm reductions use the block-diagonal seg mask (MXU).
    packed=False : plain rows; LayerNorm uses last-axis mean/var (XLU).
    """
    L = latent_size
    x = x_ref[...].astype(jnp.float32)

    # Fused vector operand rows: b1, g1, be1, b2, g2, be2 (rows 6,7 are padding).
    b1 = vecs_ref[0:1, :]
    g1 = vecs_ref[1:2, :]
    be1 = vecs_ref[2:3, :]
    b2 = vecs_ref[3:4, :]
    g2 = vecs_ref[4:5, :]
    be2 = vecs_ref[5:6, :]

    if packed:
        seg_mask = masks_ref[0]       # (Lp, Lp) block-diag, segments of L lanes
        grp_mask = masks_ref[1]       # (Lp, Lp) block-diag, groups of 8 lanes
    else:
        seg_mask = None
        grp_mask = masks_ref[0]

    def layernorm(v, gamma, beta):
        if packed:
            inv_n = 1.0 / float(L)
            mean = jnp.dot(v, seg_mask, preferred_element_type=jnp.float32) * inv_n
            c = v - mean
            var = jnp.dot(c * c, seg_mask, preferred_element_type=jnp.float32) * inv_n
        else:
            mean = jnp.mean(v, axis=-1, keepdims=True)
            c = v - mean
            var = jnp.mean(c * c, axis=-1, keepdims=True)
        return c * jax.lax.rsqrt(var + LN_EPS) * gamma + beta

    # ---- layer 1: Linear -> LayerNorm -> Mish -------------------------------
    h = jnp.dot(x, w1_ref[...], preferred_element_type=jnp.float32) + b1
    h = layernorm(h, g1, be1)
    # Mish(h) = h * tanh(softplus(h)) = h * (t^2 + 2t) / (t^2 + 2t + 2), t = exp(h).
    # Single exp; clamp keeps t^2 finite (for h > 30 the ratio is 1 in f32).
    t = jnp.exp(jnp.minimum(h, 30.0))
    num = t * (t + 2.0)
    h = h * num * pl.reciprocal(num + 2.0, approx=True)

    # ---- layer 2: Linear -> LayerNorm -> SimNorm ----------------------------
    z = jnp.dot(h, w2_ref[...], preferred_element_type=jnp.float32) + b2
    z = layernorm(z, g2, be2)

    # SimNorm: softmax within disjoint aligned groups of SIMNORM_DIM lanes.
    # Subtracting the per-physical-row max is a per-group-constant shift (exact
    # same softmax); the -80 clamp keeps every group denominator > 0 while being
    # far outside any realistic post-LayerNorm spread (no flattening window).
    z = jnp.maximum(z - jnp.max(z, axis=-1, keepdims=True), -80.0)
    e = jnp.exp(z)
    denom = jnp.dot(e, grp_mask, preferred_element_type=jnp.float32)
    r = pl.reciprocal(denom, approx=True)
    r = r * (2.0 - denom * r)          # one Newton step: output-facing reciprocal
    o_ref[...] = (e * r).astype(o_ref.dtype)


# ----------------------------------------------------------------------------
# One-time parameter preparation (packing, masks, fused vectors)
# ----------------------------------------------------------------------------
def prepare_params(w1, b1, g1, be1, w2, b2, g2, be2):
    """Pack parameters into the kernel layout ONCE (not per forward call)."""
    S, L = w1.shape
    assert L % SIMNORM_DIM == 0, "latent_size must be a multiple of 8 (SimNorm)"
    packed = L < 128                   # lane-dense 2-row packing only for small L
    pack = 2 if packed else 1
    Lp = pack * L

    w1f = jnp.asarray(w1, jnp.float32)
    w2f = jnp.asarray(w2, jnp.float32)
    if packed:
        zsl = jnp.zeros((S, L), jnp.float32)
        zll = jnp.zeros((L, L), jnp.float32)
        w1k = jnp.block([[w1f, zsl], [zsl, w1f]])
        w2k = jnp.block([[w2f, zll], [zll, w2f]])
    else:
        w1k, w2k = w1f, w2f

    rows = [jnp.tile(jnp.asarray(v, jnp.float32).reshape(1, L), (1, pack))
            for v in (b1, g1, be1, b2, g2, be2)]
    vecs = jnp.concatenate(rows + [jnp.zeros((2, Lp), jnp.float32)], axis=0)  # (8, Lp)

    r = jax.lax.broadcasted_iota(jnp.int32, (Lp, Lp), 0)
    c = jax.lax.broadcasted_iota(jnp.int32, (Lp, Lp), 1)
    grp = (r // SIMNORM_DIM == c // SIMNORM_DIM).astype(jnp.float32)
    if packed:
        seg = (r // L == c // L).astype(jnp.float32)
        masks = jnp.stack([seg, grp])            # (2, Lp, Lp)
    else:
        masks = grp[None]                        # (1, Lp, Lp)

    return {"w1": w1k, "w2": w2k, "vecs": vecs, "masks": masks}


# ----------------------------------------------------------------------------
# Forward wrapper
# ----------------------------------------------------------------------------
@functools.partial(jax.jit, static_argnames=("block_rows", "out_dtype"))
def encoder_net(state, params, *, block_rows=2048, out_dtype=jnp.float32):
    """block_rows = max logical batch rows per grid step."""
    w1, w2, vecs, masks = params["w1"], params["w2"], params["vecs"], params["masks"]
    Sp, Lp = w1.shape
    pack = 2 if masks.shape[0] == 2 else 1       # 2 masks <=> lane-packed layout
    L = Lp // pack
    S = Sp // pack

    assert state.ndim == 2 and state.shape[1] == S
    B = state.shape[0]

    # Pad the batch only to the packing/sublane granularity (NOT to block_rows).
    gran = 8 * pack
    Bpad = _round_up(B, gran)
    if Bpad != B:
        state = jnp.pad(state, ((0, Bpad - B), (0, 0)))
    rows = Bpad // pack                          # physical rows (multiple of 8)
    xp = state.reshape(rows, Sp)                 # lane-dense packing when pack==2

    # Tile: big enough to amortize per-step overhead, but >= 2 grid steps when
    # the batch allows it so v7x's two TensorCores both get work.
    tile = min(max(block_rows, 8) // pack, rows)
    if rows >= 16:
        tile = min(tile, _round_up(pl.cdiv(rows, 2), 8))
    tile = max(8, (tile // 8) * 8)
    grid = (pl.cdiv(rows, tile),)

    cost = pl.CostEstimate(
        flops=2 * Bpad * (S * L + 2 * L * L),
        transcendentals=6 * Bpad * L,            # 2 exp + 2 recip + 2 rsqrt / elem
        bytes_accessed=4 * (Bpad * S + Bpad * L + Sp * Lp
                            + (1 + masks.shape[0]) * Lp * Lp + 8 * Lp),
    )

    out = pl.pallas_call(
        functools.partial(_encoder_kernel, packed=(pack == 2), latent_size=L),
        out_shape=jax.ShapeDtypeStruct((rows, Lp), out_dtype),
        grid=grid,
        in_specs=[
            pl.BlockSpec((tile, Sp), lambda i: (i, 0)),            # activations: pipelined
            pl.BlockSpec((Sp, Lp), lambda i: (0, 0)),              # w1: VMEM-resident
            pl.BlockSpec((Lp, Lp), lambda i: (0, 0)),              # w2: VMEM-resident
            pl.BlockSpec((8, Lp), lambda i: (0, 0)),               # fused b/gamma/beta
            pl.BlockSpec((masks.shape[0], Lp, Lp), lambda i: (0, 0, 0)),  # masks
        ],
        out_specs=pl.BlockSpec((tile, Lp), lambda i: (i, 0)),
        compiler_params=pltpu.CompilerParams(
            dimension_semantics=("parallel",),
            vmem_limit_bytes=48 * 1024 * 1024,
        ),
        cost_estimate=cost,
    )(xp, w1, w2, vecs, masks)

    return out.reshape(Bpad, L)[:B]


# ----------------------------------------------------------------------------
# Reference / init / demo
# ----------------------------------------------------------------------------
def init_params(key, state_size, latent_size):
    """PyTorch-Linear-style init (U(-1/sqrt(fan_in), +1/sqrt(fan_in)))."""
    k1, k2, k3, k4 = jax.random.split(key, 4)
    lim1 = 1.0 / jnp.sqrt(jnp.float32(state_size))
    lim2 = 1.0 / jnp.sqrt(jnp.float32(latent_size))
    w1 = jax.random.uniform(k1, (state_size, latent_size), jnp.float32, -lim1, lim1)
    b1 = jax.random.uniform(k2, (1, latent_size), jnp.float32, -lim1, lim1)
    w2 = jax.random.uniform(k3, (latent_size, latent_size), jnp.float32, -lim2, lim2)
    b2 = jax.random.uniform(k4, (1, latent_size), jnp.float32, -lim2, lim2)
    g1 = jnp.ones((1, latent_size), jnp.float32)
    be1 = jnp.zeros((1, latent_size), jnp.float32)
    g2 = jnp.ones((1, latent_size), jnp.float32)
    be2 = jnp.zeros((1, latent_size), jnp.float32)
    return w1, b1, g1, be1, w2, b2, g2, be2


def _layernorm_ref(x, gamma, beta):
    mean = jnp.mean(x, axis=-1, keepdims=True)
    var = jnp.mean((x - mean) ** 2, axis=-1, keepdims=True)
    return (x - mean) * jax.lax.rsqrt(var + LN_EPS) * gamma + beta


def reference_forward(state, w1, b1, g1, be1, w2, b2, g2, be2):
    """Pure-JAX reference matching the PyTorch module."""
    h = state @ w1 + b1
    h = _layernorm_ref(h, g1, be1)
    h = h * jnp.tanh(jax.nn.softplus(h))          # Mish
    z = h @ w2 + b2
    z = _layernorm_ref(z, g2, be2)
    B, L = z.shape
    zg = z.reshape(B, L // SIMNORM_DIM, SIMNORM_DIM)
    zg = jax.nn.softmax(zg, axis=-1)
    return zg.reshape(B, L)


if __name__ == "__main__":
    key = jax.random.PRNGKey(0)
    k1, k2, k3, k4 = jax.random.split(key, 4)

    # --- packed path (latent < 128): 2 logical rows per physical row ---------
    state_size, latent_size, batch = 32, 64, 250   # odd batch -> exercises padding
    state = jax.random.normal(k1, (batch, state_size), jnp.float32)
    raw = init_params(k2, state_size, latent_size)
    prep = prepare_params(*raw)
    out = jax.block_until_ready(encoder_net(state, prep))
    ref = reference_forward(state, *raw)
    assert out.shape == (batch, latent_size)
    err = float(jnp.max(jnp.abs(out - ref)))
    assert jnp.allclose(out, ref, atol=2e-3, rtol=2e-3), f"packed mismatch (max err {err})"
    assert jnp.allclose(out.reshape(batch, -1, SIMNORM_DIM).sum(-1), 1.0, atol=1e-4)

    # --- unpacked path (latent >= 128): plain LayerNorm, no 2x packing -------
    state_size2, latent_size2, batch2 = 40, 128, 50
    state2 = jax.random.normal(k3, (batch2, state_size2), jnp.float32)
    raw2 = init_params(k4, state_size2, latent_size2)
    prep2 = prepare_params(*raw2)
    out2 = jax.block_until_ready(encoder_net(state2, prep2))
    ref2 = reference_forward(state2, *raw2)
    err2 = float(jnp.max(jnp.abs(out2 - ref2)))
    assert out2.shape == (batch2, latent_size2)
    assert jnp.allclose(out2, ref2, atol=2e-3, rtol=2e-3), f"unpacked mismatch (max err {err2})"

    print("KERNEL_OK")
</pallas_src>

<mosaic_0001>
module attributes {stable_mosaic.version = 11 : i64} {
  func.func @_encoder_kernel(%arg0: i32, %arg1: memref<64x64xf32, #tpu.memory_space<vmem>>, %arg2: memref<64x128xf32, #tpu.memory_space<vmem>>, %arg3: memref<128x128xf32, #tpu.memory_space<vmem>>, %arg4: memref<8x128xf32, #tpu.memory_space<vmem>>, %arg5: memref<2x128x128xf32, #tpu.memory_space<vmem>>, %arg6: memref<64x128xf32, #tpu.memory_space<vmem>>) attributes {dimension_semantics = [#tpu.dimension_semantics<parallel>], iteration_bounds = array<i64: 2>, scalar_prefetch = 0 : i64, scratch_operands = 0 : i64, tpu.core_type = #tpu.core_type<tc>, window_params = [{transform_indices = @transform_0, window_bounds = array<i64: 64, 64>}, {pipeline_mode = #tpu.pipeline_mode<synchronous>, transform_indices = @transform_1, window_bounds = array<i64: 64, 128>}, {pipeline_mode = #tpu.pipeline_mode<synchronous>, transform_indices = @transform_2, window_bounds = array<i64: 128, 128>}, {pipeline_mode = #tpu.pipeline_mode<synchronous>, transform_indices = @transform_3, window_bounds = array<i64: 8, 128>}, {pipeline_mode = #tpu.pipeline_mode<synchronous>, transform_indices = @transform_4, window_bounds = array<i64: 2, 128, 128>}, {transform_indices = @transform_5, window_bounds = array<i64: 64, 128>}]} {
    %c0 = arith.constant 0 : index
    %c0_0 = arith.constant 0 : index
    %0 = vector.load %arg1[%c0, %c0_0] : memref<64x64xf32, #tpu.memory_space<vmem>>, vector<64x64xf32>
    %c0_1 = arith.constant 0 : index
    %c0_2 = arith.constant 0 : index
    %1 = vector.load %arg4[%c0_1, %c0_2] : memref<8x128xf32, #tpu.memory_space<vmem>>, vector<1x128xf32>
    %c1 = arith.constant 1 : index
    %c0_3 = arith.constant 0 : index
    %2 = vector.load %arg4[%c1, %c0_3] : memref<8x128xf32, #tpu.memory_space<vmem>>, vector<1x128xf32>
    %c2 = arith.constant 2 : index
    %c0_4 = arith.constant 0 : index
    %3 = vector.load %arg4[%c2, %c0_4] : memref<8x128xf32, #tpu.memory_space<vmem>>, vector<1x128xf32>
    %c3 = arith.constant 3 : index
    %c0_5 = arith.constant 0 : index
    %4 = vector.load %arg4[%c3, %c0_5] : memref<8x128xf32, #tpu.memory_space<vmem>>, vector<1x128xf32>
    %c4 = arith.constant 4 : index
    %c0_6 = arith.constant 0 : index
    %5 = vector.load %arg4[%c4, %c0_6] : memref<8x128xf32, #tpu.memory_space<vmem>>, vector<1x128xf32>
    %c5 = arith.constant 5 : index
    %c0_7 = arith.constant 0 : index
    %6 = vector.load %arg4[%c5, %c0_7] : memref<8x128xf32, #tpu.memory_space<vmem>>, vector<1x128xf32>
    %c0_8 = arith.constant 0 : index
    %c0_9 = arith.constant 0 : index
    %c0_10 = arith.constant 0 : index
    %7 = vector.load %arg5[%c0_8, %c0_9, %c0_10] : memref<2x128x128xf32, #tpu.memory_space<vmem>>, vector<1x128x128xf32>
    %8 = vector.shape_cast %7 : vector<1x128x128xf32> to vector<128x128xf32>
    %c1_11 = arith.constant 1 : index
    %c0_12 = arith.constant 0 : index
    %c0_13 = arith.constant 0 : index
    %9 = vector.load %arg5[%c1_11, %c0_12, %c0_13] : memref<2x128x128xf32, #tpu.memory_space<vmem>>, vector<1x128x128xf32>
    %10 = vector.shape_cast %9 : vector<1x128x128xf32> to vector<128x128xf32>
    %c0_14 = arith.constant 0 : index
    %c0_15 = arith.constant 0 : index
    %11 = vector.load %arg2[%c0_14, %c0_15] : memref<64x128xf32, #tpu.memory_space<vmem>>, vector<64x128xf32>
    %cst = arith.constant dense<0.000000e+00> : vector<64x128xf32>
    %12 = tpu.matmul %0, %11, %cst {dimension_numbers = #tpu.dot_dimension_numbers<[1], [0], [0], [1], [0, 0, 1, 1], [], []>} : vector<64x64xf32>, vector<64x128xf32>, vector<64x128xf32> -> vector<64x128xf32>
    %13 = vector.broadcast %1 : vector<1x128xf32> to vector<64x128xf32>
    %14 = arith.addf %12, %13 : vector<64x128xf32>
    %cst_16 = arith.constant dense<0.000000e+00> : vector<64x128xf32>
    %15 = tpu.matmul %14, %8, %cst_16 {dimension_numbers = #tpu.dot_dimension_numbers<[1], [0], [0], [1], [0, 0, 1, 1], [], []>} : vector<64x128xf32>, vector<128x128xf32>, vector<64x128xf32> -> vector<64x128xf32>
    %cst_17 = arith.constant 1.562500e-02 : f32
    %16 = vector.broadcast %cst_17 : f32 to vector<64x128xf32>
    %17 = arith.mulf %15, %16 : vector<64x128xf32>
    %18 = arith.subf %14, %17 : vector<64x128xf32>
    %19 = arith.mulf %18, %18 : vector<64x128xf32>
    %cst_18 = arith.constant dense<0.000000e+00> : vector<64x128xf32>
    %20 = tpu.matmul %19, %8, %cst_18 {dimension_numbers = #tpu.dot_dimension_numbers<[1], [0], [0], [1], [0, 0, 1, 1], [], []>} : vector<64x128xf32>, vector<128x128xf32>, vector<64x128xf32> -> vector<64x128xf32>
    %cst_19 = arith.constant 1.562500e-02 : f32
    %21 = vector.broadcast %cst_19 : f32 to vector<64x128xf32>
    %22 = arith.mulf %20, %21 : vector<64x128xf32>
    %cst_20 = arith.constant 9.99999974E-6 : f32
    %23 = vector.broadcast %cst_20 : f32 to vector<64x128xf32>
    %24 = arith.addf %22, %23 : vector<64x128xf32>
    %25 = math.rsqrt %24 : vector<64x128xf32>
    %26 = arith.mulf %18, %25 : vector<64x128xf32>
    %27 = vector.broadcast %2 : vector<1x128xf32> to vector<64x128xf32>
    %28 = arith.mulf %26, %27 : vector<64x128xf32>
    %29 = vector.broadcast %3 : vector<1x128xf32> to vector<64x128xf32>
    %30 = arith.addf %28, %29 : vector<64x128xf32>
    %cst_21 = arith.constant 3.000000e+01 : f32
    %31 = vector.broadcast %cst_21 : f32 to vector<64x128xf32>
    %32 = arith.minimumf %30, %31 : vector<64x128xf32>
    %33 = math.exp %32 : vector<64x128xf32>
    %cst_22 = arith.constant 2.000000e+00 : f32
    %34 = vector.broadcast %cst_22 : f32 to vector<64x128xf32>
    %35 = arith.addf %33, %34 : vector<64x128xf32>
    %36 = arith.mulf %33, %35 : vector<64x128xf32>
    %37 = arith.mulf %30, %36 : vector<64x128xf32>
    %cst_23 = arith.constant 2.000000e+00 : f32
    %38 = vector.broadcast %cst_23 : f32 to vector<64x128xf32>
    %39 = arith.addf %36, %38 : vector<64x128xf32>
    %40 = tpu.reciprocal %39 {approx = true} : vector<64x128xf32> -> vector<64x128xf32>
    %41 = arith.mulf %37, %40 : vector<64x128xf32>
    %c0_24 = arith.constant 0 : index
    %c0_25 = arith.constant 0 : index
    %42 = vector.load %arg3[%c0_24, %c0_25] : memref<128x128xf32, #tpu.memory_space<vmem>>, vector<128x128xf32>
    %cst_26 = arith.constant dense<0.000000e+00> : vector<64x128xf32>
    %43 = tpu.matmul %41, %42, %cst_26 {dimension_numbers = #tpu.dot_dimension_numbers<[1], [0], [0], [1], [0, 0, 1, 1], [], []>} : vector<64x128xf32>, vector<128x128xf32>, vector<64x128xf32> -> vector<64x128xf32>
    %44 = vector.broadcast %4 : vector<1x128xf32> to vector<64x128xf32>
    %45 = arith.addf %43, %44 : vector<64x128xf32>
    %cst_27 = arith.constant dense<0.000000e+00> : vector<64x128xf32>
    %46 = tpu.matmul %45, %8, %cst_27 {dimension_numbers = #tpu.dot_dimension_numbers<[1], [0], [0], [1], [0, 0, 1, 1], [], []>} : vector<64x128xf32>, vector<128x128xf32>, vector<64x128xf32> -> vector<64x128xf32>
    %cst_28 = arith.constant 1.562500e-02 : f32
    %47 = vector.broadcast %cst_28 : f32 to vector<64x128xf32>
    %48 = arith.mulf %46, %47 : vector<64x128xf32>
    %49 = arith.subf %45, %48 : vector<64x128xf32>
    %50 = arith.mulf %49, %49 : vector<64x128xf32>
    %cst_29 = arith.constant dense<0.000000e+00> : vector<64x128xf32>
    %51 = tpu.matmul %50, %8, %cst_29 {dimension_numbers = #tpu.dot_dimension_numbers<[1], [0], [0], [1], [0, 0, 1, 1], [], []>} : vector<64x128xf32>, vector<128x128xf32>, vector<64x128xf32> -> vector<64x128xf32>
    %cst_30 = arith.constant 1.562500e-02 : f32
    %52 = vector.broadcast %cst_30 : f32 to vector<64x128xf32>
    %53 = arith.mulf %51, %52 : vector<64x128xf32>
    %cst_31 = arith.constant 9.99999974E-6 : f32
    %54 = vector.broadcast %cst_31 : f32 to vector<64x128xf32>
    %55 = arith.addf %53, %54 : vector<64x128xf32>
    %56 = math.rsqrt %55 : vector<64x128xf32>
    %57 = arith.mulf %49, %56 : vector<64x128xf32>
    %58 = vector.broadcast %5 : vector<1x128xf32> to vector<64x128xf32>
    %59 = arith.mulf %57, %58 : vector<64x128xf32>
    %60 = vector.broadcast %6 : vector<1x128xf32> to vector<64x128xf32>
    %61 = arith.addf %59, %60 : vector<64x128xf32>
    %cst_32 = arith.constant dense<0xFF800000> : vector<64xf32>
    %62 = vector.multi_reduction <maximumf>, %61, %cst_32 [1] : vector<64x128xf32> to vector<64xf32>
    %63 = vector.shape_cast %62 : vector<64xf32> to vector<64x1xf32>
    %64 = vector.broadcast %63 : vector<64x1xf32> to vector<64x128xf32>
    %65 = arith.subf %61, %64 : vector<64x128xf32>
    %cst_33 = arith.constant -8.000000e+01 : f32
    %66 = vector.broadcast %cst_33 : f32 to vector<64x128xf32>
    %67 = arith.maximumf %65, %66 : vector<64x128xf32>
    %68 = math.exp %67 : vector<64x128xf32>
    %cst_34 = arith.constant dense<0.000000e+00> : vector<64x128xf32>
    %69 = tpu.matmul %68, %10, %cst_34 {dimension_numbers = #tpu.dot_dimension_numbers<[1], [0], [0], [1], [0, 0, 1, 1], [], []>} : vector<64x128xf32>, vector<128x128xf32>, vector<64x128xf32> -> vector<64x128xf32>
    %70 = tpu.reciprocal %69 {approx = true} : vector<64x128xf32> -> vector<64x128xf32>
    %71 = arith.mulf %69, %70 : vector<64x128xf32>
    %cst_35 = arith.constant 2.000000e+00 : f32
    %72 = vector.broadcast %cst_35 : f32 to vector<64x128xf32>
    %73 = arith.subf %72, %71 : vector<64x128xf32>
    %74 = arith.mulf %70, %73 : vector<64x128xf32>
    %75 = arith.mulf %68, %74 : vector<64x128xf32>
    %c0_36 = arith.constant 0 : index
    %c0_37 = arith.constant 0 : index
    %76 = vector.load %arg6[%c0_36, %c0_37] : memref<64x128xf32, #tpu.memory_space<vmem>>, vector<64x128xf32>
    tpu.vector_store %arg6[%c0_36, %c0_37], %75 {strides = array<i32>} : memref<64x128xf32, #tpu.memory_space<vmem>>, vector<64x128xf32>,
    return
  }
  func.func @transform_0(%arg0: i32) -> (i32, i32) {
    %c0_i32 = arith.constant 0 : i32
    %c0_i32_0 = arith.constant 0 : i32
    return %arg0, %c0_i32 : i32, i32
  }
  func.func @transform_1(%arg0: i32) -> (i32, i32) {
    %c0_i32 = arith.constant 0 : i32
    %c0_i32_0 = arith.constant 0 : i32
    %c0_i32_1 = arith.constant 0 : i32
    return %c0_i32, %c0_i32_0 : i32, i32
  }
  func.func @transform_2(%arg0: i32) -> (i32, i32) {
    %c0_i32 = arith.constant 0 : i32
    %c0_i32_0 = arith.constant 0 : i32
    %c0_i32_1 = arith.constant 0 : i32
    return %c0_i32, %c0_i32_0 : i32, i32
  }
  func.func @transform_3(%arg0: i32) -> (i32, i32) {
    %c0_i32 = arith.constant 0 : i32
    %c0_i32_0 = arith.constant 0 : i32
    %c0_i32_1 = arith.constant 0 : i32
    return %c0_i32, %c0_i32_0 : i32, i32
  }
  func.func @transform_4(%arg0: i32) -> (i32, i32, i32) {
    %c0_i32 = arith.constant 0 : i32
    %c0_i32_0 = arith.constant 0 : i32
    %c0_i32_1 = arith.constant 0 : i32
    %c0_i32_2 = arith.constant 0 : i32
    return %c0_i32, %c0_i32_0, %c0_i32_1 : i32, i32, i32
  }
  func.func @transform_5(%arg0: i32) -> (i32, i32) {
    %c0_i32 = arith.constant 0 : i32
    %c0_i32_0 = arith.constant 0 : i32
    return %arg0, %c0_i32 : i32, i32
  }
}

</mosaic_0001>

<bundles_post_ra>
// kernel: encoder_net.1
= control target key start
LH: loop header
LB: loop body
LE: loop exit
PB: predicated region body
PF: predicated region fallthrough
CT: control target
= control target key end

     0   :  { %s2086_s18 = smov 0   ;;  %s2636_s0 = inlined_call_operand.vmem [shape: f32[128,64], index: 0, kind: input, shape index: {}]   ;;  %s2637_s1 = inlined_call_operand.vmem [shape: f32[64,128], index: 1, kind: input, shape index: {}]   ;;  %s2638_s2 = inlined_call_operand.vmem [shape: f32[128,128], index: 2, kind: input, shape index: {}]   ;;  %s2639_s3 = inlined_call_operand.vmem [shape: f32[8,128], index: 3, kind: input, shape index: {}]   ;;  %s2640_s4 = inlined_call_operand.vmem [shape: f32[2,128,128], index: 4, kind: input, shape index: {}]   ;;  %s2641_s5 = inlined_call_operand.vmem [shape: f32[128,128], index: 5, kind: output, shape index: {}]  }
   0x1 LB: > { %s1451_s19 = sadd.s32 4294967295, %s2054_s18   ;;  %p1455_p0 = scmp.ge.s32.totalorder %s2054_s18, 1  ;;  %s2054_s18 = sphi %s2086_s18, %s15_s18  }
   0x2   : > { %p188_p1 = scmp.lt.s32.totalorder %s2054_s18, 3 }
   0x4   : > { %p189_p2 = pnand %p1455_p0, %p188_p1 }
   0x5   : > { %s1456_s24 = sshll.u32 (!%p189_p2), %s1451_s19, 3 }
   0x6   : > { %192 = sbr.rel (%p189_p2) target bundleno = 1699 (0x6a3), region = 40  ;;  %p217_p3 = scmp.lt.s32.totalorder (!%p189_p2), %s1456_s24, 15 }
   0xb   : > { %v282_v0 = vld [vmem:[%s2637_s1 + $0x38] sm:$0xff]  ;;  %v281_v1 = vld [vmem:[%s2637_s1 + $0x30] sm:$0xff]  ;;  %v280_v2 = vld [vmem:[%s2637_s1 + $0x28] sm:$0xff]  ;;  %s2643_s24 = smov (!%p217_p3, %s1456_s24), 15  ;;  %vm287_vm0 = vcmask 523264  }
   0xc   : > { %1652 = vmatprep.subr.mxu0 %v282_v0  ;;  %v2106_v3 = vld [vmem:[%s2640_s4 + $0x78] sm:$0xff]  ;;  %v2114_v4 = vld [vmem:[%s2640_s4 + $0x70] sm:$0xff]  ;;  %v279_v5 = vld [vmem:[%s2637_s1 + $0x20] sm:$0xff]  ;;  %s1457_s10 = sshll.u32 %s2643_s24, 3 }
   0xd   : > { %1653 = vmatpush3.msra.mxu0 %v282_v0  ;;  %1680 = vmatprep.subr.mxu1 %v2106_v3  ;;  %v2123_v6 = vld [vmem:[%s2640_s4 + $0x68] sm:$0xff]  ;;  %v278_v7 = vld [vmem:[%s2637_s1 + $0x18] sm:$0xff]  ;;  %s2135_s15 = scalar_lea.vmem %s2636_s0, %s1457_s10  ;;  %v2143_v9 = vld [vmem:[%s2640_s4 + $0x60] sm:$0xff]  ;;  %s2621_s17 = scalar_lea.vmem %s2641_s5, %s1457_s10 }
   0xe   : > { %1654 = vmatprep.subr.mxu0 %v281_v1  ;;  %1681 = vmatpush3.msra.mxu1 %v2106_v3  ;;  %v228_v8 = vld [vmem:[%s2135_s15] sm:$0xff]  ;;  %v277_v10 = vld [vmem:[%s2637_s1 + $0x10] sm:$0xff]  ;;  %v2153_v11 = vld [vmem:[%s2640_s4 + $0x58] sm:$0xff] }
   0xf   : > { %1655 = vmatpush3.msra.mxu0 %v281_v1  ;;  %1682 = vmatprep.subr.mxu1 %v2114_v4  ;;  %v276_v12 = vld [vmem:[%s2637_s1 + $0x8] sm:$0xff]  ;;  %v2163_v13 = vld [vmem:[%s2640_s4 + $0x50] sm:$0xff]  ;;  %v275_v14 = vld [vmem:[%s2637_s1] sm:$0xff] }
  0x10   : > { %1656 = vmatprep.subr.mxu0 %v280_v2  ;;  %1683 = vmatpush3.msra.mxu1 %v2114_v4  ;;  %v2173_v15 = vld [vmem:[%s2640_s4 + $0x48] sm:$0xff]  ;;  %v230_v17 = vld [vmem:[%s2135_s15 + $0x10] sm:$0xff]  ;;  %v2182_v18 = vld [vmem:[%s2640_s4 + $0x40] sm:$0xff] }
  0x11   : > { %1657 = vmatpush3.msra.mxu0 %v280_v2  ;;  %1684 = vmatprep.subr.mxu1 %v2123_v6  ;;  %v229_v16 = vld [vmem:[%s2135_s15 + $0x8] sm:$0xff]  ;;  %v2190_v19 = vld [vmem:[%s2640_s4 + $0x38] sm:$0xff]  ;;  %v232_v21 = vld [vmem:[%s2135_s15 + $0x20] sm:$0xff] }
  0x12   : > { %1658 = vmatprep.subr.mxu0 %v279_v5  ;;  %1668 = vmatprep.mubr.msk.f32.mxu0 %vm287_vm0, %v228_v8  ;;  %v231_v20 = vld [vmem:[%s2135_s15 + $0x18] sm:$0xff]  ;;  %v2200_v22 = vld [vmem:[%s2640_s4 + $0x30] sm:$0xff]  ;;  %v2210_v23 = vld [vmem:[%s2640_s4 + $0x28] sm:$0xff] }
  0x13   : > { %1659 = vmatpush3.msra.mxu0 %v279_v5  ;;  %1685 = vmatpush3.msra.mxu1 %v2123_v6  ;;  %v233_v24 = vld [vmem:[%s2135_s15 + $0x28] sm:$0xff]  ;;  %v234_v25 = vld [vmem:[%s2135_s15 + $0x30] sm:$0xff]  ;;  %v2220_v26 = vld [vmem:[%s2640_s4 + $0x20] sm:$0xff] }
  0x14   : > { %1660 = vmatprep.subr.mxu0 %v278_v7  ;;  %1686 = vmatprep.subr.mxu1 %v2143_v9  ;;  %v2230_v27 = vld [vmem:[%s2640_s4 + $0x18] sm:$0xff]  ;;  %v2264_v29 = vld [vmem:[%s2640_s4 + $0x10] sm:$0xff]  ;;  %v2272_v30 = vld [vmem:[%s2640_s4 + $0x8] sm:$0xff] }
  0x15   : > { %1661 = vmatpush3.msra.mxu0 %v278_v7  ;;  %1687 = vmatpush3.msra.mxu1 %v2143_v9  ;;  %v235_v28 = vld [vmem:[%s2135_s15 + $0x38] sm:$0xff]  ;;  %v2281_v31 = vld [vmem:[%s2640_s4] sm:$0xff] }
  0x16   : > { %1662 = vmatprep.subr.mxu0 %v277_v10  ;;  %1688 = vmatprep.subr.mxu1 %v2153_v11  ;;  %v1476_v33 = vld [vmem:[%s2639_s3] ss:$0 sm:$0xff] }
  0x17   : > { %1663 = vmatpush3.msra.mxu0 %v277_v10  ;;  %1689 = vmatpush3.msra.mxu1 %v2153_v11 }
  0x18   : > { %1664 = vmatprep.subr.mxu0 %v276_v12  ;;  %1690 = vmatprep.subr.mxu1 %v2163_v13 }
  0x19   : > { %1665 = vmatpush3.msra.mxu0 %v276_v12  ;;  %1691 = vmatpush3.msra.mxu1 %v2163_v13 }
  0x1a   : > { %1666 = vmatprep.subr.mxu0 %v275_v14  ;;  %1692 = vmatprep.subr.mxu1 %v2173_v15 }
  0x1b   : > { %1667 = vmatpush3.msra.mxu0 %v275_v14  ;;  %1693 = vmatpush3.msra.mxu1 %v2173_v15 }
  0x1c   : > { %1669 = vmatmul.mubr.msk.f32.vlgmr.msra.gmra.mxu0 %vm287_vm0, %v229_v16  ;;  %1694 = vmatprep.subr.mxu1 %v2182_v18 }
  0x1d   : > { %1671 = vmatprep.mubr.msk.f32.mxu0 %vm287_vm0, %v230_v17  ;;  %1695 = vmatpush3.msra.mxu1 %v2182_v18 }
  0x1e   : > { %1724 = vmatprep.subr.mxu0 %v2106_v3  ;;  %1696 = vmatprep.subr.mxu1 %v2190_v19 }
  0x1f   : > { %1725 = vmatpush3.msra.mxu0 %v2106_v3  ;;  %1697 = vmatpush3.msra.mxu1 %v2190_v19 }
  0x20   : > { %1672 = vmatmul.mubr.msk.f32.gmra.mxu0 %vm287_vm0, %v231_v20  ;;  %1698 = vmatprep.subr.mxu1 %v2200_v22 }
  0x21   : > { %1674 = vmatprep.mubr.msk.f32.mxu0 %vm287_vm0, %v232_v21  ;;  %1699 = vmatpush3.msra.mxu1 %v2200_v22 }
  0x22   : > { %1726 = vmatprep.subr.mxu0 %v2114_v4  ;;  %1700 = vmatprep.subr.mxu1 %v2210_v23 }
  0x23   : > { %1727 = vmatpush3.msra.mxu0 %v2114_v4  ;;  %1701 = vmatpush3.msra.mxu1 %v2210_v23 }
  0x24   : > { %1675 = vmatmul.mubr.msk.f32.gmra.mxu0 %vm287_vm0, %v233_v24  ;;  %1702 = vmatprep.subr.mxu1 %v2220_v26 }
  0x25   : > { %1677 = vmatprep.mubr.msk.f32.mxu0 %vm287_vm0, %v234_v25  ;;  %1703 = vmatpush3.msra.mxu1 %v2220_v26 }
  0x26   : > { %1728 = vmatprep.subr.mxu0 %v2123_v6  ;;  %1704 = vmatprep.subr.mxu1 %v2230_v27 }
  0x27   : > { %1729 = vmatpush3.msra.mxu0 %v2123_v6  ;;  %1705 = vmatpush3.msra.mxu1 %v2230_v27 }
  0x28   : > { %1678 = vmatmul.mubr.msk.f32.gmra.mxu0 %vm287_vm0, %v235_v28  ;;  %1730 = vmatprep.subr.mxu0 %v2143_v9 }
  0x29   : > { %1731 = vmatpush3.msra.mxu0 %v2143_v9  ;;  %1706 = vmatprep.subr.mxu1 %v2264_v29 }
  0x2a   : > { %1732 = vmatprep.subr.mxu0 %v2153_v11  ;;  %1707 = vmatpush3.msra.mxu1 %v2264_v29 }
  0x2b   : > { %1733 = vmatpush3.msra.mxu0 %v2153_v11  ;;  %1708 = vmatprep.subr.mxu1 %v2272_v30 }
  0x2c   : > { %1734 = vmatprep.subr.mxu0 %v2163_v13  ;;  %1709 = vmatpush3.msra.mxu1 %v2272_v30 }
  0x2d   : > { %1735 = vmatpush3.msra.mxu0 %v2163_v13  ;;  %1710 = vmatprep.subr.mxu1 %v2281_v31 }
  0x2e   : > { %1736 = vmatprep.subr.mxu0 %v2173_v15  ;;  %1711 = vmatpush3.msra.mxu1 %v2281_v31 }
  0x2f   : > { %1737 = vmatpush3.msra.mxu0 %v2173_v15 }
  0x30   : > { %1738 = vmatprep.subr.mxu0 %v2182_v18 }
  0x31   : > { %1739 = vmatpush3.msra.mxu0 %v2182_v18 }
  0x32   : > { %1740 = vmatprep.subr.mxu0 %v2190_v19 }
  0x33   : > { %1741 = vmatpush3.msra.mxu0 %v2190_v19 }
  0x34   : > { %1742 = vmatprep.subr.mxu0 %v2200_v22 }
  0x35   : > { %1743 = vmatpush3.msra.mxu0 %v2200_v22 }
  0x36   : > { %1744 = vmatprep.subr.mxu0 %v2210_v23 }
  0x37   : > { %1745 = vmatpush3.msra.mxu0 %v2210_v23 }
  0x38   : > { %1746 = vmatprep.subr.mxu0 %v2220_v26 }
  0x39   : > { %1747 = vmatpush3.msra.mxu0 %v2220_v26 }
  0x3a   : > { %1748 = vmatprep.subr.mxu0 %v2230_v27 }
  0x3b   : > { %1749 = vmatpush3.msra.mxu0 %v2230_v27 }
  0x3c   : > { %1750 = vmatprep.subr.mxu0 %v2264_v29 }
  0x3d   : > { %1751 = vmatpush3.msra.mxu0 %v2264_v29 }
  0x3e   : > { %1752 = vmatprep.subr.mxu0 %v2272_v30 }
  0x3f   : > { %1753 = vmatpush3.msra.mxu0 %v2272_v30 }
  0x40   : > { %1754 = vmatprep.subr.mxu0 %v2281_v31 }
  0x41   : > { %1755 = vmatpush3.msra.mxu0 %v2281_v31 }
  0x42   : > { %1812 = vmatprep.subr.mxu0 %v2106_v3 }
  0xdc   : > { %v1670_v32 = vpop.f32.mrf.mxu0 }
  0xdd   : > { %v384_v36 = vadd.f32 %v1670_v32, %v1476_v33 }
  0xde   : > { %v378_v34 = vpop.f32.mrf.mxu0 }
  0xdf   : > { %v379_v35 = vadd.f32 %v1476_v33, %v378_v34  ;;  %v793_v34 = vld [vmem:[%s2638_s2 + $0x70] sm:$0xff] }
  0xe0   : > { %v1673_v37 = vpop.f32.mrf.mxu0 }
  0xe1   : > { %1712 = vmatprep.mubr.f32.mxu1 %v379_v35  ;;  %v394_v40 = vadd.f32 %v1673_v37, %v1476_v33  ;;  %v790_v37 = vld [vmem:[%s2638_s2 + $0x58] sm:$0xff] }
  0xe2   : > { %v388_v38 = vpop.f32.mrf.mxu0  ;;  %1713 = vmatmul.mubr.f32.vlgmr.msra.gmra.mxu1 %v384_v36 }
  0xe3   : > { %v389_v39 = vadd.f32 %v1476_v33, %v388_v38  ;;  %v789_v38 = vld [vmem:[%s2638_s2 + $0x50] sm:$0xff] }
  0xe4   : > { %v1676_v41 = vpop.f32.mrf.mxu0 }
  0xe5   : > { %1715 = vmatprep.mubr.f32.mxu1 %v389_v39  ;;  %v404_v42 = vadd.f32 %v1676_v41, %v1476_v33  ;;  %v786_v41 = vld [vmem:[%s2638_s2 + $0x38] sm:$0xff] }
  0xe6   : > { %v398_v43 = vpop.f32.mrf.mxu0  ;;  %1716 = vmatmul.mubr.f32.gmra.mxu1 %v394_v40 }
  0xe7   : > { %v399_v44 = vadd.f32 %v1476_v33, %v398_v43  ;;  %v784_v43 = vld [vmem:[%s2638_s2 + $0x28] sm:$0xff] }
  0xe8   : > { %v1679_v45 = vpop.f32.mrf.mxu0 }
  0xe9   : > { %1718 = vmatprep.mubr.f32.mxu1 %v399_v44  ;;  %v414_v46 = vadd.f32 %v1679_v45, %v1476_v33  ;;  %v782_v45 = vld [vmem:[%s2638_s2 + $0x18] sm:$0xff] }
  0xea   : > { %v408_v47 = vpop.f32.mrf.mxu0  ;;  %1719 = vmatmul.mubr.f32.gmra.mxu1 %v404_v42 }
  0xeb   : > { %v409_v48 = vadd.f32 %v1476_v33, %v408_v47  ;;  %v794_v33 = vld [vmem:[%s2638_s2 + $0x78] sm:$0xff]  ;;  %v780_v47 = vld [vmem:[%s2638_s2 + $0x8] sm:$0xff] }
  0xec   : > { %1768 = vmatprep.subr.mxu1 %v794_v33 }
  0xed   : > { %1721 = vmatprep.mubr.f32.mxu1 %v409_v48  ;;  %1769 = vmatpush3.msra.mxu1 %v794_v33 }
  0xee   : > { %1722 = vmatmul.mubr.f32.gmra.mxu1 %v414_v46  ;;  %1770 = vmatprep.subr.mxu1 %v793_v34 }
  0xef   : > { %1771 = vmatpush3.msra.mxu1 %v793_v34  ;;  %v1485_v34 = vld [vmem:[%s2639_s3 + $0x1] ss:$0 sm:$0xff] }
 0x1a2   : > { %v1714_v49 = vpop.f32.mrf.mxu1 }
 0x1a3   : > { %v523_v50 = vmul.f32 0.015625, %v1714_v49 }
 0x1a4   : > { %v483_v51 = vpop.f32.mrf.mxu1 }
 0x1a5   : > { %v522_v52 = vmul.f32 0.015625, %v483_v51  ;;  %v2292_v53 = vsub.f32 %v384_v36, %v523_v50  ;;  %v791_v36 = vld [vmem:[%s2638_s2 + $0x60] sm:$0xff] }
 0x1a6   : > { %v1717_v54 = vpop.f32.mrf.mxu1 }
 0x1a7   : > { %v2294_v55 = vsub.f32 %v379_v35, %v522_v52  ;;  %v525_v56 = vmul.f32 0.015625, %v1717_v54  ;;  %v539_v60 = vmul.f32 %v2292_v53, %v2292_v53  ;;  %v792_v35 = vld [vmem:[%s2638_s2 + $0x68] sm:$0xff] }
 0x1a8   : > { %v493_v57 = vpop.f32.mrf.mxu1  ;;  %1772 = vmatprep.subr.mxu1 %v792_v35 }
 0x1a9   : > { %v524_v58 = vmul.f32 0.015625, %v493_v57  ;;  %v538_v59 = vmul.f32 %v2294_v55, %v2294_v55  ;;  %v2300_v61 = vsub.f32 %v394_v40, %v525_v56  ;;  %1773 = vmatpush3.msra.mxu1 %v792_v35  ;;  %v787_v40 = vld [vmem:[%s2638_s2 + $0x40] sm:$0xff] }
 0x1aa   : > { %v1720_v62 = vpop.f32.mrf.mxu1  ;;  %1774 = vmatprep.subr.mxu1 %v791_v36 }
 0x1ab   : > { %v2302_v63 = vsub.f32 %v389_v39, %v524_v58  ;;  %v527_v0 = vmul.f32 0.015625, %v1720_v62  ;;  %1756 = vmatprep.mubr.f32.mxu0 %v538_v59  ;;  %v541_v10 = vmul.f32 %v2300_v61, %v2300_v61  ;;  %1775 = vmatpush3.msra.mxu1 %v791_v36  ;;  %v788_v39 = vld [vmem:[%s2638_s2 + $0x48] sm:$0xff] }
 0x1ac   : > { %v503_v1 = vpop.f32.mrf.mxu1  ;;  %1757 = vmatmul.mubr.f32.vlgmr.msra.gmra.mxu0 %v539_v60  ;;  %1776 = vmatprep.subr.mxu1 %v790_v37 }
 0x1ad   : > { %v526_v2 = vmul.f32 0.015625, %v503_v1  ;;  %v540_v5 = vmul.f32 %v2302_v63, %v2302_v63  ;;  %1813 = vmatpush3.msra.mxu0 %v2106_v3  ;;  %v2307_v7 = vsub.f32 %v404_v42, %v527_v0  ;;  %1777 = vmatpush3.msra.mxu1 %v790_v37  ;;  %v785_v42 = vld [vmem:[%s2638_s2 + $0x30] sm:$0xff]  ;;  %v1486_v37 = vld [vmem:[%s2639_s3 + $0x2] ss:$0 sm:$0xff] }
 0x1ae   : > { %v1723_v8 = vpop.f32.mrf.mxu1  ;;  %1814 = vmatprep.subr.mxu0 %v2114_v4  ;;  %1778 = vmatprep.subr.mxu1 %v789_v38 }
 0x1af   : > { %v2312_v12 = vsub.f32 %v399_v44, %v526_v2  ;;  %v529_v14 = vmul.f32 0.015625, %v1723_v8  ;;  %1759 = vmatprep.mubr.f32.mxu0 %v540_v5  ;;  %1815 = vmatpush3.msra.mxu0 %v2114_v4  ;;  %v543_v24 = vmul.f32 %v2307_v7, %v2307_v7  ;;  %v783_v44 = vld [vmem:[%s2638_s2 + $0x20] sm:$0xff] }
 0x1b0   : > { %v513_v16 = vpop.f32.mrf.mxu1  ;;  %1760 = vmatmul.mubr.f32.gmra.mxu0 %v541_v10  ;;  %1816 = vmatprep.subr.mxu0 %v2123_v6 }
 0x1b1   : > { %v528_v17 = vmul.f32 0.015625, %v513_v16  ;;  %v542_v20 = vmul.f32 %v2312_v12, %v2312_v12  ;;  %1817 = vmatpush3.msra.mxu0 %v2123_v6  ;;  %v2319_v21 = vsub.f32 %v414_v46, %v529_v14  ;;  %1779 = vmatpush3.msra.mxu1 %v789_v38  ;;  %v781_v46 = vld [vmem:[%s2638_s2 + $0x10] sm:$0xff] }
 0x1b2   : > { %1818 = vmatprep.subr.mxu0 %v2143_v9  ;;  %1780 = vmatprep.subr.mxu1 %v788_v39 }
 0x1b3   : > { %v2324_v25 = vsub.f32 %v409_v48, %v528_v17  ;;  %1762 = vmatprep.mubr.f32.mxu0 %v542_v20  ;;  %1819 = vmatpush3.msra.mxu0 %v2143_v9  ;;  %v545_v32 = vmul.f32 %v2319_v21, %v2319_v21  ;;  %v779_v48 = vld [vmem:[%s2638_s2] sm:$0xff] }
 0x1b4   : > { %1763 = vmatmul.mubr.f32.gmra.mxu0 %v543_v24  ;;  %1820 = vmatprep.subr.mxu0 %v2153_v11 }
 0x1b5   : > { %v544_v28 = vmul.f32 %v2324_v25, %v2324_v25  ;;  %1821 = vmatpush3.msra.mxu0 %v2153_v11  ;;  %1781 = vmatpush3.msra.mxu1 %v788_v39 }
 0x1b6   : > { %1822 = vmatprep.subr.mxu0 %v2163_v13  ;;  %1782 = vmatprep.subr.mxu1 %v787_v40 }
 0x1b7   : > { %1765 = vmatprep.mubr.f32.mxu0 %v544_v28  ;;  %1823 = vmatpush3.msra.mxu0 %v2163_v13 }
 0x1b8   : > { %1766 = vmatmul.mubr.f32.gmra.mxu0 %v545_v32  ;;  %1824 = vmatprep.subr.mxu0 %v2173_v15 }
 0x1b9   : > { %1825 = vmatpush3.msra.mxu0 %v2173_v15  ;;  %1783 = vmatpush3.msra.mxu1 %v787_v40 }
 0x1ba   : > { %1826 = vmatprep.subr.mxu0 %v2182_v18  ;;  %1784 = vmatprep.subr.mxu1 %v786_v41 }
 0x1bb   : > { %1827 = vmatpush3.msra.mxu0 %v2182_v18  ;;  %1785 = vmatpush3.msra.mxu1 %v786_v41 }
 0x1bc   : > { %1828 = vmatprep.subr.mxu0 %v2190_v19  ;;  %1786 = vmatprep.subr.mxu1 %v785_v42 }
 0x1bd   : > { %1829 = vmatpush3.msra.mxu0 %v2190_v19  ;;  %1787 = vmatpush3.msra.mxu1 %v785_v42 }
 0x1be   : > { %1830 = vmatprep.subr.mxu0 %v2200_v22  ;;  %1788 = vmatprep.subr.mxu1 %v784_v43 }
 0x1bf   : > { %1831 = vmatpush3.msra.mxu0 %v2200_v22  ;;  %1789 = vmatpush3.msra.mxu1 %v784_v43 }
 0x1c0   : > { %1832 = vmatprep.subr.mxu0 %v2210_v23  ;;  %1790 = vmatprep.subr.mxu1 %v783_v44 }
 0x1c1   : > { %1833 = vmatpush3.msra.mxu0 %v2210_v23  ;;  %1791 = vmatpush3.msra.mxu1 %v783_v44 }
 0x1c2   : > { %1834 = vmatprep.subr.mxu0 %v2220_v26  ;;  %1792 = vmatprep.subr.mxu1 %v782_v45 }
 0x1c3   : > { %1835 = vmatpush3.msra.mxu0 %v2220_v26  ;;  %1793 = vmatpush3.msra.mxu1 %v782_v45 }
 0x1c4   : > { %1836 = vmatprep.subr.mxu0 %v2230_v27  ;;  %1794 = vmatprep.subr.mxu1 %v781_v46 }
 0x1c5   : > { %1837 = vmatpush3.msra.mxu0 %v2230_v27  ;;  %1795 = vmatpush3.msra.mxu1 %v781_v46 }
 0x1c6   : > { %1838 = vmatprep.subr.mxu0 %v2264_v29  ;;  %1796 = vmatprep.subr.mxu1 %v780_v47 }
 0x1c7   : > { %1839 = vmatpush3.msra.mxu0 %v2264_v29  ;;  %1797 = vmatpush3.msra.mxu1 %v780_v47 }
 0x1c8   : > { %1840 = vmatprep.subr.mxu0 %v2272_v30  ;;  %1798 = vmatprep.subr.mxu1 %v779_v48 }
 0x1c9   : > { %1841 = vmatpush3.msra.mxu0 %v2272_v30  ;;  %1799 = vmatpush3.msra.mxu1 %v779_v48 }
 0x1ca   : > { %1842 = vmatprep.subr.mxu0 %v2281_v31  ;;  %1856 = vmatprep.subr.mxu1 %v2106_v3 }
 0x1cb   : > { %1843 = vmatpush3.msra.mxu0 %v2281_v31 }
 0x26c   : > { %v1758_v49 = vpop.f32.mrf.mxu0 }
 0x26d   : > { %v652_v50 = vmul.f32 0.015625, %v1758_v49 }
 0x26e   : > { %v612_v51 = vpop.f32.mrf.mxu0 }
 0x26f   : > { %v660_v52 = vadd.f32 1e-05, %v652_v50  ;;  %v651_v54 = vmul.f32 0.015625, %v612_v51 }
 0x270   : > { %v1761_v56 = vpop.f32.mrf.mxu0 }
 0x271   : > { %1952 = vrsqrt.f32 %v660_v52  ;;  %v659_v57 = vadd.f32 1e-05, %v651_v54  ;;  %v654_v58 = vmul.f32 0.015625, %v1761_v56 }
 0x272   : > { %v622_v59 = vpop.f32.mrf.mxu0 }
 0x273   : > { %1954 = vrsqrt.f32 %v659_v57  ;;  %v662_v60 = vadd.f32 1e-05, %v654_v58  ;;  %v653_v62 = vmul.f32 0.015625, %v622_v59 }
 0x274   : > { %v1764_v0 = vpop.f32.mrf.mxu0 }
 0x275   : > { %1956 = vrsqrt.f32 %v662_v60  ;;  %v661_v1 = vadd.f32 1e-05, %v653_v62  ;;  %v656_v2 = vmul.f32 0.015625, %v1764_v0 }
 0x276   : > { %v632_v5 = vpop.f32.mrf.mxu0 }
 0x277   : > { %1958 = vrsqrt.f32 %v661_v1  ;;  %v664_v8 = vadd.f32 1e-05, %v656_v2  ;;  %v655_v10 = vmul.f32 0.015625, %v632_v5 }
 0x278   : > { %v1767_v14 = vpop.f32.mrf.mxu0 }
 0x279   : > { %1960 = vrsqrt.f32 %v664_v8  ;;  %v663_v16 = vadd.f32 1e-05, %v655_v10  ;;  %v658_v17 = vmul.f32 0.015625, %v1767_v14 }
 0x27a   : > { %v642_v20 = vpop.f32.mrf.mxu0 }
 0x27b   : > { %1962 = vrsqrt.f32 %v663_v16  ;;  %v666_v24 = vadd.f32 1e-05, %v658_v17  ;;  %v657_v28 = vmul.f32 0.015625, %v642_v20 }
 0x27d   : > { %1964 = vrsqrt.f32 %v666_v24  ;;  %v665_v32 = vadd.f32 1e-05, %v657_v28 }
 0x27e   : > { %v1953_v33 = vpop.eup %1952 }
 0x27f   : > { %v676_v35 = vmul.f32 %v1953_v33, %v2292_v53  ;;  %1966 = vrsqrt.f32 %v665_v32 }
 0x280   : > { %v1955_v36 = vpop.eup %1954 }
 0x281   : > { %v688_v38 = vmul.f32 %v1485_v34, %v676_v35  ;;  %v675_v39 = vmul.f32 %v1955_v36, %v2294_v55 }
 0x282   : > { %v1957_v40 = vpop.eup %1956 }
 0x283   : > { %v687_v41 = vmul.f32 %v1485_v34, %v675_v39  ;;  %v2412_v42 = vadd.f32 %v1486_v37, %v688_v38  ;;  %v678_v43 = vmul.f32 %v1957_v40, %v2300_v61 }
 0x284   : > { %v1959_v44 = vpop.eup %1958 }
 0x285   : > { %v2415_v45 = vadd.f32 %v1486_v37, %v687_v41  ;;  %v708_v53 = vmin.f32 %v2412_v42, 30.0  ;;  %v677_v46 = vmul.f32 %v1959_v44, %v2302_v63  ;;  %v690_v47 = vmul.f32 %v1485_v34, %v678_v43 }
 0x286   : > { %v1961_v48 = vpop.eup %1960 }
 0x287   : > { %v707_v49 = vmin.f32 %v2415_v45, 30.0  ;;  %v717_v50 = vmul.f32 1.442695, %v708_v53  ;;  %v689_v51 = vmul.f32 %v1485_v34, %v677_v46  ;;  %v2420_v55 = vadd.f32 %v1486_v37, %v690_v47 }
 0x288   : > { %v1963_v52 = vpop.eup %1962  ;;  %v680_v54 = vmul.f32 %v1961_v48, %v2307_v7 }
 0x289   : > { %v715_v56 = vmul.f32 1.442695, %v707_v49  ;;  %1968 = vpow2.f32 %v717_v50  ;;  %v2423_v61 = vadd.f32 %v1486_v37, %v689_v51  ;;  %v710_v57 = vmin.f32 %v2420_v55, 30.0 }
 0x28a   : > { %v1965_v58 = vpop.eup %1964  ;;  %v679_v63 = vmul.f32 %v1963_v52, %v2312_v12  ;;  %v692_v59 = vmul.f32 %v1485_v34, %v680_v54 }
 0x28b   : > { %1970 = vpow2.f32 %v715_v56  ;;  %v709_v60 = vmin.f32 %v2423_v61, 30.0  ;;  %v721_v62 = vmul.f32 1.442695, %v710_v57  ;;  %v682_v0 = vmul.f32 %v1965_v58, %v2319_v21 }
 0x28c   : > { %v1967_v1 = vpop.eup %1966  ;;  %v691_v2 = vmul.f32 %v1485_v34, %v679_v63  ;;  %v2429_v5 = vadd.f32 %v1486_v37, %v692_v59 }
 0x28d   : > { %v719_v7 = vmul.f32 1.442695, %v709_v60  ;;  %1972 = vpow2.f32 %v721_v62  ;;  %v681_v8 = vmul.f32 %v1967_v1, %v2324_v25  ;;  %v694_v10 = vmul.f32 %v1485_v34, %v682_v0 }
 0x28e   : > { %v2432_v14 = vadd.f32 %v1486_v37, %v691_v2  ;;  %v712_v12 = vmin.f32 %v2429_v5, 30.0 }
 0x28f   : > { %1974 = vpow2.f32 %v719_v7  ;;  %v693_v16 = vmul.f32 %v1485_v34, %v681_v8  ;;  %v2435_v17 = vadd.f32 %v1486_v37, %v694_v10 }
 0x290   : > { %v711_v20 = vmin.f32 %v2432_v14, 30.0  ;;  %v725_v21 = vmul.f32 1.442695, %v712_v12 }
 0x291   : > { %v2438_v24 = vadd.f32 %v1486_v37, %v693_v16  ;;  %v714_v28 = vmin.f32 %v2435_v17, 30.0 }
 0x292   : > { %v723_v32 = vmul.f32 1.442695, %v711_v20  ;;  %1976 = vpow2.f32 %v725_v21 }
 0x293   : > { %v713_v25 = vmin.f32 %v2438_v24, 30.0  ;;  %v729_v33 = vmul.f32 1.442695, %v714_v28 }
 0x294   : > { %1978 = vpow2.f32 %v723_v32 }
 0x295   : > { %v727_v35 = vmul.f32 1.442695, %v713_v25  ;;  %1980 = vpow2.f32 %v729_v33 }
 0x296   : > { %v1969_v36 = vpop.eup %1968 }
 0x297   : > { %v732_v38 = vadd.f32 2.0, %v1969_v36  ;;  %1982 = vpow2.f32 %v727_v35 }
 0x298   : > { %v1971_v34 = vpop.eup %1970 }
 0x299   : > { %v731_v39 = vadd.f32 2.0, %v1971_v34  ;;  %v740_v40 = vmul.f32 %v1969_v36, %v732_v38 }
 0x29a   : > { %v1973_v41 = vpop.eup %1972 }
 0x29b   : > { %v739_v43 = vmul.f32 %v1971_v34, %v731_v39  ;;  %v756_v37 = vadd.f32 2.0, %v740_v40  ;;  %v734_v44 = vadd.f32 2.0, %v1973_v41  ;;  %v748_v28 = vmul.f32 %v740_v40, %v2412_v42 }
 0x29c   : > { %v1975_v53 = vpop.eup %1974 }
 0x29d   : > { %v755_v46 = vadd.f32 2.0, %v739_v43  ;;  %v733_v47 = vadd.f32 2.0, %v1975_v53  ;;  %1984 = vrcp.f32 %v756_v37  ;;  %v742_v48 = vmul.f32 %v1973_v41, %v734_v44 }
 0x29e   : > { %v747_v20 = vmul.f32 %v739_v43, %v2415_v45 }
 0x29f   : > { %v1977_v49 = vpop.eup %1976  ;;  %1986 = vrcp.f32 %v755_v46  ;;  %v741_v50 = vmul.f32 %v1975_v53, %v733_v47  ;;  %v758_v51 = vadd.f32 2.0, %v742_v48  ;;  %v750_v38 = vmul.f32 %v742_v48, %v2420_v55 }
 0x2a0   : > { %v736_v52 = vadd.f32 2.0, %v1977_v49 }
 0x2a1   : > { %v1979_v54 = vpop.eup %1978  ;;  %v757_v56 = vadd.f32 2.0, %v741_v50  ;;  %1988 = vrcp.f32 %v758_v51  ;;  %v749_v35 = vmul.f32 %v741_v50, %v2423_v61 }
 0x2a2   : > { %v1981_v57 = vpop.eup %1980  ;;  %v735_v58 = vadd.f32 2.0, %v1979_v54  ;;  %v744_v63 = vmul.f32 %v1977_v49, %v736_v52 }
 0x2a3   : > { %1990 = vrcp.f32 %v757_v56  ;;  %v738_v59 = vadd.f32 2.0, %v1981_v57 }
 0x2a4   : > { %v1983_v60 = vpop.eup %1982  ;;  %v743_v62 = vmul.f32 %v1979_v54, %v735_v58  ;;  %v760_v0 = vadd.f32 2.0, %v744_v63  ;;  %v752_v40 = vmul.f32 %v744_v63, %v2429_v5 }
 0x2a5   : > { %v737_v1 = vadd.f32 2.0, %v1983_v60  ;;  %v746_v2 = vmul.f32 %v1981_v57, %v738_v59 }
 0x2a6   : > { %v759_v7 = vadd.f32 2.0, %v743_v62  ;;  %1992 = vrcp.f32 %v760_v0  ;;  %v751_v45 = vmul.f32 %v743_v62, %v2432_v14 }
 0x2a7   : > { %v745_v8 = vmul.f32 %v1983_v60, %v737_v1  ;;  %v762_v10 = vadd.f32 2.0, %v746_v2  ;;  %v754_v37 = vmul.f32 %v746_v2, %v2435_v17 }
 0x2a8   : > { %1994 = vrcp.f32 %v759_v7 }
 0x2a9   : > { %v761_v12 = vadd.f32 2.0, %v745_v8  ;;  %1996 = vrcp.f32 %v762_v10  ;;  %v753_v43 = vmul.f32 %v745_v8, %v2438_v24 }
 0x2aa   : > { %v1985_v16 = vpop.eup %1984 }
 0x2ab   : > { %1998 = vrcp.f32 %v761_v12  ;;  %v772_v25 = vmul.f32 %v1985_v16, %v748_v28 }
 0x2ac   : > { %v1987_v21 = vpop.eup %1986 }
 0x2ad   : > { %v771_v32 = vmul.f32 %v1987_v21, %v747_v20 }
 0x2ae   : > { %v1989_v33 = vpop.eup %1988 }
 0x2af   : > { %1800 = vmatprep.mubr.f32.mxu1 %v771_v32  ;;  %v774_v39 = vmul.f32 %v1989_v33, %v750_v38  ;;  %v1475_v38 = vld [vmem:[%s2640_s4 + $0xf8] sm:$0xff] }
 0x2b0   : > { %v1991_v36 = vpop.eup %1990  ;;  %1801 = vmatmul.mubr.f32.vlgmr.msra.gmra.mxu1 %v772_v25  ;;  %1900 = vmatprep.subr.mxu0 %v1475_v38 }
 0x2b1   : > { %v773_v34 = vmul.f32 %v1991_v36, %v749_v35  ;;  %1857 = vmatpush3.msra.mxu1 %v2106_v3 }
 0x2b2   : > { %1858 = vmatprep.subr.mxu1 %v2114_v4 }
 0x2b3   : > { %1803 = vmatprep.mubr.f32.mxu1 %v773_v34  ;;  %1859 = vmatpush3.msra.mxu1 %v2114_v4  ;;  %v1993_v42 = vpop.eup %1992  ;;  %v1474_v34 = vld [vmem:[%s2640_s4 + $0xf0] sm:$0xff] }
 0x2b4   : > { %1804 = vmatmul.mubr.f32.gmra.mxu1 %v774_v39  ;;  %1860 = vmatprep.subr.mxu1 %v2123_v6  ;;  %v776_v41 = vmul.f32 %v1993_v42, %v752_v40  ;;  %v1473_v39 = vld [vmem:[%s2640_s4 + $0xe8] sm:$0xff]  ;;  %v1472_v42 = vld [vmem:[%s2640_s4 + $0xe0] sm:$0xff] }
 0x2b5   : > { %v1995_v61 = vpop.eup %1994  ;;  %1861 = vmatpush3.msra.mxu1 %v2123_v6 }
 0x2b6   : > { %v775_v55 = vmul.f32 %v1995_v61, %v751_v45  ;;  %1862 = vmatprep.subr.mxu1 %v2143_v9  ;;  %v1997_v3 = vpop.eup %1996 }
 0x2b7   : > { %1863 = vmatpush3.msra.mxu1 %v2143_v9  ;;  %v778_v6 = vmul.f32 %v1997_v3, %v754_v37 }
 0x2b8   : > { %v1999_v4 = vpop.eup %1998  ;;  %1806 = vmatprep.mubr.f32.mxu1 %v775_v55  ;;  %1864 = vmatprep.subr.mxu1 %v2153_v11 }
 0x2b9   : > { %1807 = vmatmul.mubr.f32.gmra.mxu1 %v776_v41  ;;  %v777_v14 = vmul.f32 %v1999_v4, %v753_v43 }
 0x2ba   : > { %1865 = vmatpush3.msra.mxu1 %v2153_v11  ;;  %v1487_v11 = vld [vmem:[%s2639_s3 + $0x3] ss:$0 sm:$0xff] }
 0x2bb   : > { %1809 = vmatprep.mubr.f32.mxu1 %v777_v14  ;;  %1866 = vmatprep.subr.mxu1 %v2163_v13 }
 0x2bc   : > { %1867 = vmatpush3.msra.mxu1 %v2163_v13 }
 0x2bd   : > { %1810 = vmatmul.mubr.f32.gmra.mxu1 %v778_v6  ;;  %1868 = vmatprep.subr.mxu1 %v2173_v15 }
 0x2be   : > { %1869 = vmatpush3.msra.mxu1 %v2173_v15 }
 0x2bf   : > { %1870 = vmatprep.subr.mxu1 %v2182_v18 }
 0x2c0   : > { %1871 = vmatpush3.msra.mxu1 %v2182_v18 }
 0x2c1   : > { %1872 = vmatprep.subr.mxu1 %v2190_v19 }
 0x2c2   : > { %1873 = vmatpush3.msra.mxu1 %v2190_v19 }
 0x2c3   : > { %1874 = vmatprep.subr.mxu1 %v2200_v22 }
 0x2c4   : > { %1875 = vmatpush3.msra.mxu1 %v2200_v22 }
 0x2c5   : > { %1876 = vmatprep.subr.mxu1 %v2210_v23 }
 0x2c6   : > { %1877 = vmatpush3.msra.mxu1 %v2210_v23 }
 0x2c7   : > { %1878 = vmatprep.subr.mxu1 %v2220_v26 }
 0x2c8   : > { %1879 = vmatpush3.msra.mxu1 %v2220_v26 }
 0x2c9   : > { %1880 = vmatprep.subr.mxu1 %v2230_v27 }
 0x2ca   : > { %1881 = vmatpush3.msra.mxu1 %v2230_v27 }
 0x2cb   : > { %1882 = vmatprep.subr.mxu1 %v2264_v29 }
 0x2cc   : > { %1883 = vmatpush3.msra.mxu1 %v2264_v29 }
 0x2cd   : > { %1884 = vmatprep.subr.mxu1 %v2272_v30 }
 0x2ce   : > { %1885 = vmatpush3.msra.mxu1 %v2272_v30 }
 0x2cf   : > { %1886 = vmatprep.subr.mxu1 %v2281_v31 }
 0x2d0   : > { %1887 = vmatpush3.msra.mxu1 %v2281_v31 }
 0x370   : > { %v1802_v9 = vpop.f32.mrf.mxu1 }
 0x371   : > { %v871_v18 = vadd.f32 %v1802_v9, %v1487_v11 }
 0x372   : > { %v865_v13 = vpop.f32.mrf.mxu1 }
 0x373   : > { %v866_v15 = vadd.f32 %v1487_v11, %v865_v13 }
 0x374   : > { %v1805_v19 = vpop.f32.mrf.mxu1 }
 0x375   : > { %1844 = vmatprep.mubr.f32.mxu0 %v866_v15  ;;  %v881_v26 = vadd.f32 %v1805_v19, %v1487_v11 }
 0x376   : > { %v875_v22 = vpop.f32.mrf.mxu1  ;;  %1845 = vmatmul.mubr.f32.vlgmr.msra.gmra.mxu0 %v871_v18 }
 0x377   : > { %v876_v23 = vadd.f32 %v1487_v11, %v875_v22  ;;  %1901 = vmatpush3.msra.mxu0 %v1475_v38  ;;  %v1469_v38 = vld [vmem:[%s2640_s4 + $0xc8] sm:$0xff] }
 0x378   : > { %1902 = vmatprep.subr.mxu0 %v1474_v34 }
 0x379   : > { %v1808_v27 = vpop.f32.mrf.mxu1  ;;  %1847 = vmatprep.mubr.f32.mxu0 %v876_v23  ;;  %1903 = vmatpush3.msra.mxu0 %v1474_v34  ;;  %v1468_v34 = vld [vmem:[%s2640_s4 + $0xc0] sm:$0xff] }
 0x37a   : > { %1848 = vmatmul.mubr.f32.gmra.mxu0 %v881_v26  ;;  %v891_v31 = vadd.f32 %v1808_v27, %v1487_v11  ;;  %1904 = vmatprep.subr.mxu0 %v1473_v39 }
 0x37b   : > { %v885_v29 = vpop.f32.mrf.mxu1  ;;  %1905 = vmatpush3.msra.mxu0 %v1473_v39  ;;  %v1467_v39 = vld [vmem:[%s2640_s4 + $0xb8] sm:$0xff] }
 0x37c   : > { %v886_v30 = vadd.f32 %v1487_v11, %v885_v29  ;;  %1906 = vmatprep.subr.mxu0 %v1472_v42 }
 0x37d   : > { %v1811_v5 = vpop.f32.mrf.mxu1  ;;  %1907 = vmatpush3.msra.mxu0 %v1472_v42  ;;  %v1466_v42 = vld [vmem:[%s2640_s4 + $0xb0] sm:$0xff] }
 0x37e   : > { %1850 = vmatprep.mubr.f32.mxu0 %v886_v30  ;;  %v901_v44 = vadd.f32 %v1811_v5, %v1487_v11 }
 0x37f   : > { %v895_v17 = vpop.f32.mrf.mxu1  ;;  %1851 = vmatmul.mubr.f32.gmra.mxu0 %v891_v31 }
 0x380   : > { %v896_v24 = vadd.f32 %v1487_v11, %v895_v17 }
 0x382   : > { %1853 = vmatprep.mubr.f32.mxu0 %v896_v24 }
 0x383   : > { %1854 = vmatmul.mubr.f32.gmra.mxu0 %v901_v44 }
 0x436   : > { %v1846_v53 = vpop.f32.mrf.mxu0 }
 0x437   : > { %v1010_v46 = vmul.f32 0.015625, %v1846_v53 }
 0x438   : > { %v970_v47 = vpop.f32.mrf.mxu0 }
 0x439   : > { %v1009_v48 = vmul.f32 0.015625, %v970_v47  ;;  %v2484_v49 = vsub.f32 %v871_v18, %v1010_v46  ;;  %v1488_v46 = vld [vmem:[%s2639_s3 + $0x4] ss:$0 sm:$0xff] }
 0x43a   : > { %v1849_v50 = vpop.f32.mrf.mxu0 }
 0x43b   : > { %v2486_v51 = vsub.f32 %v866_v15, %v1009_v48  ;;  %v1012_v52 = vmul.f32 0.015625, %v1849_v50  ;;  %v1026_v58 = vmul.f32 %v2484_v49, %v2484_v49  ;;  %v1489_v50 = vld [vmem:[%s2639_s3 + $0x5] ss:$0 sm:$0xff] }
 0x43c   : > { %v980_v54 = vpop.f32.mrf.mxu0 }
 0x43d   : > { %v1011_v56 = vmul.f32 0.015625, %v980_v54  ;;  %v1025_v57 = vmul.f32 %v2486_v51, %v2486_v51  ;;  %v2492_v63 = vsub.f32 %v881_v26, %v1012_v52 }
 0x43f   : > { %v2494_v59 = vsub.f32 %v876_v23, %v1011_v56  ;;  %v1852_v60 = vpop.f32.mrf.mxu0  ;;  %1888 = vmatprep.mubr.f32.mxu1 %v1025_v57  ;;  %v1028_v7 = vmul.f32 %v2492_v63, %v2492_v63 }
 0x440   : > { %v1014_v62 = vmul.f32 0.015625, %v1852_v60  ;;  %1889 = vmatmul.mubr.f32.vlgmr.msra.gmra.mxu1 %v1026_v58 }
 0x441   : > { %v990_v0 = vpop.f32.mrf.mxu0  ;;  %v1027_v1 = vmul.f32 %v2494_v59, %v2494_v59 }
 0x442   : > { %v1013_v2 = vmul.f32 0.015625, %v990_v0  ;;  %v2500_v8 = vsub.f32 %v891_v31, %v1014_v62 }
 0x443   : > { %v1855_v10 = vpop.f32.mrf.mxu0  ;;  %1891 = vmatprep.mubr.f32.mxu1 %v1027_v1 }
 0x444   : > { %v2502_v12 = vsub.f32 %v886_v30, %v1013_v2  ;;  %v1016_v16 = vmul.f32 0.015625, %v1855_v10  ;;  %1892 = vmatmul.mubr.f32.gmra.mxu1 %v1028_v7  ;;  %v1030_v25 = vmul.f32 %v2500_v8, %v2500_v8 }
 0x445   : > { %v1000_v20 = vpop.f32.mrf.mxu0 }
 0x446   : > { %v1015_v21 = vmul.f32 0.015625, %v1000_v20  ;;  %v1029_v28 = vmul.f32 %v2502_v12, %v2502_v12  ;;  %v2506_v32 = vsub.f32 %v901_v44, %v1016_v16 }
 0x448   : > { %v2510_v33 = vsub.f32 %v896_v24, %v1015_v21  ;;  %1894 = vmatprep.mubr.f32.mxu1 %v1029_v28  ;;  %v1032_v36 = vmul.f32 %v2506_v32, %v2506_v32 }
 0x449   : > { %1895 = vmatmul.mubr.f32.gmra.mxu1 %v1030_v25 }
 0x44a   : > { %v1031_v35 = vmul.f32 %v2510_v33, %v2510_v33 }
 0x44c   : > { %1897 = vmatprep.mubr.f32.mxu1 %v1031_v35  ;;  %v1471_v35 = vld [vmem:[%s2640_s4 + $0xd8] sm:$0xff] }
 0x44d   : > { %1898 = vmatmul.mubr.f32.gmra.mxu1 %v1032_v36  ;;  %1908 = vmatprep.subr.mxu0 %v1471_v35 }
 0x44e   : > { %1909 = vmatpush3.msra.mxu0 %v1471_v35 }
 0x500   : > { %v1890_v45 = vpop.f32.mrf.mxu1 }
 0x501   : > { %v1139_v61 = vmul.f32 0.015625, %v1890_v45  ;;  %v1465_v45 = vld [vmem:[%s2640_s4 + $0xa8] sm:$0xff] }
 0x502   : > { %v1099_v40 = vpop.f32.mrf.mxu1 }
 0x503   : > { %v1147_v55 = vadd.f32 1e-05, %v1139_v61  ;;  %v1138_v3 = vmul.f32 0.015625, %v1099_v40  ;;  %v1464_v61 = vld [vmem:[%s2640_s4 + $0xa0] sm:$0xff]  ;;  %v1463_v40 = vld [vmem:[%s2640_s4 + $0x98] sm:$0xff] }
 0x504   : > { %v1893_v41 = vpop.f32.mrf.mxu1 }
 0x505   : > { %2000 = vrsqrt.f32 %v1147_v55  ;;  %v1146_v43 = vadd.f32 1e-05, %v1138_v3  ;;  %v1141_v4 = vmul.f32 0.015625, %v1893_v41  ;;  %v1462_v55 = vld [vmem:[%s2640_s4 + $0x90] sm:$0xff]  ;;  %v1461_v3 = vld [vmem:[%s2640_s4 + $0x88] sm:$0xff]  ;;  %v1460_v41 = vld [vmem:[%s2640_s4 + $0x80] sm:$0xff] }
 0x506   : > { %v1109_v14 = vpop.f32.mrf.mxu1 }
 0x507   : > { %2002 = vrsqrt.f32 %v1146_v43  ;;  %v1149_v37 = vadd.f32 1e-05, %v1141_v4  ;;  %v1140_v6 = vmul.f32 0.015625, %v1109_v14 }
 0x509   : > { %2004 = vrsqrt.f32 %v1149_v37  ;;  %v1148_v9 = vadd.f32 1e-05, %v1140_v6  ;;  %v1896_v11 = vpop.f32.mrf.mxu1 }
 0x50a   : > { %v1143_v13 = vmul.f32 0.015625, %v1896_v11 }
 0x50b   : > { %2006 = vrsqrt.f32 %v1148_v9  ;;  %v1119_v15 = vpop.f32.mrf.mxu1 }
 0x50c   : > { %v1151_v18 = vadd.f32 1e-05, %v1143_v13  ;;  %v1142_v19 = vmul.f32 0.015625, %v1119_v15 }
 0x50d   : > { %v1899_v22 = vpop.f32.mrf.mxu1 }
 0x50e   : > { %2008 = vrsqrt.f32 %v1151_v18  ;;  %v1150_v23 = vadd.f32 1e-05, %v1142_v19  ;;  %v1145_v26 = vmul.f32 0.015625, %v1899_v22 }
 0x50f   : > { %v1129_v27 = vpop.f32.mrf.mxu1 }
 0x510   : > { %2010 = vrsqrt.f32 %v1150_v23  ;;  %v1153_v29 = vadd.f32 1e-05, %v1145_v26  ;;  %v1144_v30 = vmul.f32 0.015625, %v1129_v27 }
 0x512   : > { %v2001_v31 = vpop.eup %2000  ;;  %2012 = vrsqrt.f32 %v1153_v29  ;;  %v1152_v5 = vadd.f32 1e-05, %v1144_v30 }
 0x513   : > { %v1163_v44 = vmul.f32 %v2001_v31, %v2484_v49 }
 0x514   : > { %v2003_v17 = vpop.eup %2002  ;;  %2014 = vrsqrt.f32 %v1152_v5 }
 0x515   : > { %v1162_v24 = vmul.f32 %v2003_v17, %v2486_v51  ;;  %v1175_v54 = vmul.f32 %v1488_v46, %v1163_v44 }
 0x516   : > { %v2005_v53 = vpop.eup %2004 }
 0x517   : > { %v1174_v47 = vmul.f32 %v1488_v46, %v1162_v24  ;;  %v1165_v51 = vmul.f32 %v2005_v53, %v2492_v63  ;;  %v2541_v60 = vadd.f32 %v1489_v50, %v1175_v54 }
 0x518   : > { %v2007_v48 = vpop.eup %2006 }
 0x519   : > { %v2536_v52 = vadd.f32 %v1489_v50, %v1174_v47  ;;  %v1164_v56 = vmul.f32 %v2007_v48, %v2494_v59  ;;  %v1177_v0 = vmul.f32 %v1488_v46, %v1165_v51 }
 0x51b   : > { %v2009_v57 = vpop.eup %2008  ;;  %1194 = vmax.xlane.f32.xlu0 %v2536_v52  ;;  %v1176_v49 = vmul.f32 %v1488_v46, %v1164_v56  ;;  %v2549_v10 = vadd.f32 %v1489_v50, %v1177_v0 }
 0x51c   : > { %v1167_v1 = vmul.f32 %v2009_v57, %v2500_v8 }
 0x51d   : > { %v2011_v58 = vpop.eup %2010  ;;  %v2543_v62 = vadd.f32 %v1489_v50, %v1176_v49 }
 0x51e   : > { %v1166_v2 = vmul.f32 %v2011_v58, %v2502_v12  ;;  %v1179_v16 = vmul.f32 %v1488_v46, %v1167_v1 }
 0x51f   : > { %v2013_v7 = vpop.eup %2012  ;;  %1196 = vmax.xlane.f32.xlu0 %v2541_v60  ;;  %1198 = vmax.xlane.f32.xlu1 %v2543_v62 }
 0x520   : > { %v1178_v63 = vmul.f32 %v1488_v46, %v1166_v2  ;;  %v1169_v20 = vmul.f32 %v2013_v7, %v2506_v32  ;;  %v2557_v12 = vadd.f32 %v1489_v50, %v1179_v16  ;;  %v1470_v32 = vld [vmem:[%s2640_s4 + $0xd0] sm:$0xff] }
 0x521   : > { %v2015_v59 = vpop.eup %2014  ;;  %1910 = vmatprep.subr.mxu0 %v1470_v32 }
 0x522   : > { %v2552_v21 = vadd.f32 %v1489_v50, %v1178_v63  ;;  %v1168_v28 = vmul.f32 %v2015_v59, %v2510_v33  ;;  %v1181_v25 = vmul.f32 %v1488_v46, %v1169_v20  ;;  %1911 = vmatpush3.msra.mxu0 %v1470_v32 }
 0x523   : > { %1200 = vmax.xlane.f32.xlu1 %v2549_v10  ;;  %1912 = vmatprep.subr.mxu0 %v1469_v38 }
 0x524   : > { %1202 = vmax.xlane.f32.xlu0 %v2552_v21  ;;  %v1180_v8 = vmul.f32 %v1488_v46, %v1168_v28  ;;  %v2569_v33 = vadd.f32 %v1489_v50, %v1181_v25  ;;  %1913 = vmatpush3.msra.mxu0 %v1469_v38 }
 0x525   : > { %1914 = vmatprep.subr.mxu0 %v1468_v34 }
 0x526   : > { %v2562_v36 = vadd.f32 %v1489_v50, %v1180_v8  ;;  %1915 = vmatpush3.msra.mxu0 %v1468_v34 }
 0x527   : > { %1204 = vmax.xlane.f32.xlu1 %v2557_v12  ;;  %1916 = vmatprep.subr.mxu0 %v1467_v39 }
 0x528   : > { %1206 = vmax.xlane.f32.xlu0 %v2562_v36  ;;  %1917 = vmatpush3.msra.mxu0 %v1467_v39 }
 0x529   : > { %1918 = vmatprep.subr.mxu0 %v1466_v42 }
 0x52a   : > { %1919 = vmatpush3.msra.mxu0 %v1466_v42 }
 0x52b   : > { %1208 = vmax.xlane.f32.xlu1 %v2569_v33  ;;  %1920 = vmatprep.subr.mxu0 %v1465_v45 }
 0x52c   : > { %1921 = vmatpush3.msra.mxu0 %v1465_v45 }
 0x52d   : > { %1922 = vmatprep.subr.mxu0 %v1464_v61 }
 0x52e   : > { %1923 = vmatpush3.msra.mxu0 %v1464_v61 }
 0x52f   : > { %1924 = vmatprep.subr.mxu0 %v1463_v40 }
 0x530   : > { %1925 = vmatpush3.msra.mxu0 %v1463_v40 }
 0x531   : > { %1926 = vmatprep.subr.mxu0 %v1462_v55 }
 0x532   : > { %1927 = vmatpush3.msra.mxu0 %v1462_v55 }
 0x533   : > { %1928 = vmatprep.subr.mxu0 %v1461_v3 }
 0x534   : > { %1929 = vmatpush3.msra.mxu0 %v1461_v3 }
 0x535   : > { %1930 = vmatprep.subr.mxu0 %v1460_v41 }
 0x536   : > { %1931 = vmatpush3.msra.mxu0 %v1460_v41 }
 0x5a4   : > { %v1195_v43 = vpop.xlane.xlu0 %1194 }
 0x5a5   : > { %v1210_v4 = vsub.f32 %v2536_v52, %v1195_v43 }
 0x5a7   : > { %v1218_v14 = vmax.f32 %v1210_v4, -80.0 }
 0x5a8   : > { %v1197_v37 = vpop.xlane.xlu0 %1196  ;;  %v1199_v6 = vpop.xlane.xlu1 %1198 }
 0x5a9   : > { %v1226_v9 = vmul.f32 1.442695, %v1218_v14  ;;  %v1211_v11 = vsub.f32 %v2541_v60, %v1197_v37  ;;  %v1212_v13 = vsub.f32 %v2543_v62, %v1199_v6 }
 0x5ab   : > { %2016 = vpow2.f32 %v1226_v9  ;;  %v1219_v15 = vmax.f32 %v1211_v11, -80.0  ;;  %v1220_v18 = vmax.f32 %v1212_v13, -80.0 }
 0x5ac   : > { %v1201_v19 = vpop.xlane.xlu1 %1200 }
 0x5ad   : > { %v1228_v22 = vmul.f32 1.442695, %v1219_v15  ;;  %v1230_v23 = vmul.f32 1.442695, %v1220_v18  ;;  %v1213_v26 = vsub.f32 %v2549_v10, %v1201_v19  ;;  %v1203_v27 = vpop.xlane.xlu0 %1202 }
 0x5ae   : > { %v1214_v29 = vsub.f32 %v2552_v21, %v1203_v27 }
 0x5af   : > { %2018 = vpow2.f32 %v1228_v22  ;;  %v1221_v30 = vmax.f32 %v1213_v26, -80.0 }
 0x5b0   : > { %2020 = vpow2.f32 %v1230_v23  ;;  %v1222_v31 = vmax.f32 %v1214_v29, -80.0  ;;  %v1205_v5 = vpop.xlane.xlu1 %1204 }
 0x5b1   : > { %v1232_v17 = vmul.f32 1.442695, %v1221_v30  ;;  %v1215_v24 = vsub.f32 %v2557_v12, %v1205_v5  ;;  %v1207_v44 = vpop.xlane.xlu0 %1206 }
 0x5b2   : > { %v1234_v53 = vmul.f32 1.442695, %v1222_v31  ;;  %v1216_v46 = vsub.f32 %v2562_v36, %v1207_v44 }
 0x5b3   : > { %2022 = vpow2.f32 %v1232_v17  ;;  %v1223_v47 = vmax.f32 %v1215_v24, -80.0 }
 0x5b4   : > { %2024 = vpow2.f32 %v1234_v53  ;;  %v1224_v48 = vmax.f32 %v1216_v46, -80.0  ;;  %v1209_v50 = vpop.xlane.xlu1 %1208 }
 0x5b5   : > { %v1236_v52 = vmul.f32 1.442695, %v1223_v47  ;;  %v1217_v54 = vsub.f32 %v2569_v33, %v1209_v50 }
 0x5b6   : > { %v1238_v56 = vmul.f32 1.442695, %v1224_v48 }
 0x5b7   : > { %2026 = vpow2.f32 %v1236_v52  ;;  %v1225_v51 = vmax.f32 %v1217_v54, -80.0 }
 0x5b8   : > { %v2017_v57 = vpop.eup %2016  ;;  %2028 = vpow2.f32 %v1238_v56 }
 0x5b9   : > { %v1240_v49 = vmul.f32 1.442695, %v1225_v51  ;;  %1932 = vmatprep.mubr.f32.mxu0 %v2017_v57 }
 0x5bb   : > { %2030 = vpow2.f32 %v1240_v49 }
 0x5bc   : > { %v2019_v58 = vpop.eup %2018 }
 0x5bd   : > { %v2021_v60 = vpop.eup %2020  ;;  %1933 = vmatmul.mubr.f32.vlgmr.msra.gmra.mxu0 %v2019_v58 }
 0x5be   : > { %1935 = vmatprep.mubr.f32.mxu0 %v2021_v60 }
 0x5c0   : > { %v2023_v62 = vpop.eup %2022 }
 0x5c1   : > { %v2610_v0 = vpop.eup %2024  ;;  %1936 = vmatmul.mubr.f32.gmra.mxu0 %v2023_v62 }
 0x5c2   : > { %1938 = vmatprep.mubr.f32.mxu0 %v2610_v0 }
 0x5c4   : > { %v2027_v1 = vpop.eup %2026 }
 0x5c5   : > { %v2613_v2 = vpop.eup %2028  ;;  %1939 = vmatmul.mubr.f32.gmra.mxu0 %v2027_v1 }
 0x5c6   : > { %1941 = vmatprep.mubr.f32.mxu0 %v2613_v2 }
 0x5c8   : > { %v2031_v7 = vpop.eup %2030 }
 0x5c9   : > { %1942 = vmatmul.mubr.f32.gmra.mxu0 %v2031_v7 }
 0x67d   : > { %v1934_v63 = vpop.f32.mrf.mxu0 }
 0x67e   : > { %2032 = vrcp.f32 %v1934_v63 }
 0x67f   : > { %v1308_v59 = vpop.f32.mrf.mxu0 }
 0x680   : > { %2034 = vrcp.f32 %v1308_v59 }
 0x681   : > { %v1937_v10 = vpop.f32.mrf.mxu0 }
 0x682   : > { %2036 = vrcp.f32 %v1937_v10 }
 0x683   : > { %v1318_v16 = vpop.f32.mrf.mxu0 }
 0x684   : > { %2038 = vrcp.f32 %v1318_v16 }
 0x685   : > { %v1940_v20 = vpop.f32.mrf.mxu0 }
 0x686   : > { %2040 = vrcp.f32 %v1940_v20 }
 0x687   : > { %v1328_v21 = vpop.f32.mrf.mxu0 }
 0x688   : > { %2042 = vrcp.f32 %v1328_v21 }
 0x689   : > { %v1943_v28 = vpop.f32.mrf.mxu0 }
 0x68a   : > { %2044 = vrcp.f32 %v1943_v28 }
 0x68b   : > { %v2033_v8 = vpop.eup %2032  ;;  %v1338_v12 = vpop.f32.mrf.mxu0 }
 0x68c   : > { %v1356_v25 = vmul.f32 %v2033_v8, %v1934_v63  ;;  %2046 = vrcp.f32 %v1338_v12 }
 0x68d   : > { %v2035_v35 = vpop.eup %2034 }
 0x68e   : > { %v1364_v36 = vsub.f32 2.0, %v1356_v25  ;;  %v1355_v32 = vmul.f32 %v2035_v35, %v1308_v59 }
 0x68f   : > { %v2037_v33 = vpop.eup %2036 }
 0x690   : > { %v1372_v38 = vmul.f32 %v2033_v8, %v1364_v36  ;;  %v1363_v34 = vsub.f32 2.0, %v1355_v32  ;;  %v1358_v39 = vmul.f32 %v2037_v33, %v1937_v10 }
 0x691   : > { %v2039_v42 = vpop.eup %2038 }
 0x692   : > { %v1380_v45 = vmul.f32 %v2019_v58, %v1372_v38  ;;  %v1371_v61 = vmul.f32 %v2035_v35, %v1363_v34  ;;  %v1366_v40 = vsub.f32 2.0, %v1358_v39  ;;  %v1357_v55 = vmul.f32 %v2039_v42, %v1318_v16 }
 0x693   : > { %v2041_v3 = vpop.eup %2040 }
 0x694   : > { %1388 = vst [vmem:[%s2621_s17 + $0x8] sm:$0xff] %v1380_v45  ;;  %v1379_v41 = vmul.f32 %v2017_v57, %v1371_v61  ;;  %v1374_v43 = vmul.f32 %v2037_v33, %v1366_v40  ;;  %v1365_v4 = vsub.f32 2.0, %v1357_v55  ;;  %v1360_v14 = vmul.f32 %v2041_v3, %v1940_v20 }
 0x695   : > { %v2043_v37 = vpop.eup %2042 }
 0x696   : > { %1387 = vst [vmem:[%s2621_s17] sm:$0xff] %v1379_v41  ;;  %v1382_v6 = vmul.f32 %v2023_v62, %v1374_v43  ;;  %v1373_v9 = vmul.f32 %v2039_v42, %v1365_v4  ;;  %v1368_v11 = vsub.f32 2.0, %v1360_v14  ;;  %v1359_v13 = vmul.f32 %v2043_v37, %v1328_v21 }
 0x697   : > { %v2045_v15 = vpop.eup %2044 }
 0x698   : > { %1390 = vst [vmem:[%s2621_s17 + $0x18] sm:$0xff] %v1382_v6  ;;  %v1381_v18 = vmul.f32 %v2021_v60, %v1373_v9  ;;  %v1376_v19 = vmul.f32 %v2041_v3, %v1368_v11  ;;  %v1367_v22 = vsub.f32 2.0, %v1359_v13  ;;  %v1362_v23 = vmul.f32 %v2045_v15, %v1943_v28 }
 0x699   : > { %v2047_v26 = vpop.eup %2046 }
 0x69a   : > { %1389 = vst [vmem:[%s2621_s17 + $0x10] sm:$0xff] %v1381_v18  ;;  %v1384_v27 = vmul.f32 %v2027_v1, %v1376_v19  ;;  %v1375_v29 = vmul.f32 %v2043_v37, %v1367_v22  ;;  %v1370_v30 = vsub.f32 2.0, %v1362_v23  ;;  %v1361_v31 = vmul.f32 %v2047_v26, %v1338_v12 }
 0x69c   : > { %1392 = vst [vmem:[%s2621_s17 + $0x28] sm:$0xff] %v1384_v27  ;;  %v1383_v5 = vmul.f32 %v2610_v0, %v1375_v29  ;;  %v1378_v17 = vmul.f32 %v2045_v15, %v1370_v30  ;;  %v1369_v24 = vsub.f32 2.0, %v1361_v31 }
 0x69e   : > { %1391 = vst [vmem:[%s2621_s17 + $0x20] sm:$0xff] %v1383_v5  ;;  %v1386_v44 = vmul.f32 %v2031_v7, %v1378_v17  ;;  %v1377_v53 = vmul.f32 %v2047_v26, %v1369_v24 }
 0x6a0   : > { %1394 = vst [vmem:[%s2621_s17 + $0x38] sm:$0xff] %v1386_v44  ;;  %v1385_v46 = vmul.f32 %v2613_v2, %v1377_v53 }
 0x6a2   : > { %1393 = vst [vmem:[%s2621_s17 + $0x30] sm:$0xff] %v1385_v46 }
 0x6a3 PF: > { %s15_s18 = sadd.s32 1, %s2054_s18  }
 0x6a4   : > { %p12_p4 = scmp.ge.s32.totalorder %s15_s18, 4  }
 0x6a6   :  { %14 = sbr.rel (!%p12_p4) target bundleno = 1 (0x1), region = 71 }

</bundles_post_ra>
